<compile_context>
chip_gen: v5e
topology: v5e:2x2
jax: 0.10.0
libtpu: 0.0.40
codegen_flags: <defaults>
</compile_context>

<pallas_src>
import functools

import jax
import jax.numpy as jnp
from jax.experimental import pallas as pl
from jax.experimental.pallas import tpu as pltpu

SMOOTHING = 0.1
CONFIDENCE = 1.0 - SMOOTHING


def _ls_ce_kernel(x_ref, tgt_ref, out_ref, acc_ref, *, tile_n, total_n):
    i = pl.program_id(0)

    @pl.when(i == 0)
    def _init():
        acc_ref[0, 0] = jnp.float32(0.0)

    x = x_ref[...].astype(jnp.float32)                         # (tile_n, C)

    # Only m and lse are needed from the softmax; logprobs never materialized.
    m = jnp.max(x, axis=-1, keepdims=True)                     # (tile_n, 1)
    lse = jnp.log(jnp.sum(jnp.exp(x - m), axis=-1, keepdims=True))

    # x[i, target[i]] via lane-iota compare + masked sum (no cross-lane gather).
    tgt = tgt_ref[...]                                         # (tile_n, 1) int32
    cols = jax.lax.broadcasted_iota(jnp.int32, x.shape, 1)
    x_tgt = jnp.sum(jnp.where(cols == tgt, x, 0.0), axis=-1, keepdims=True)

    x_mean = jnp.sum(x, axis=-1, keepdims=True) * (1.0 / x.shape[-1])

    # loss_i = conf*nll_i + smoothing*smooth_i
    #        = (m_i + lse_i) - conf * x[i, t_i] - smoothing * mean_c(x[i, :])
    row_loss = (m + lse) - CONFIDENCE * x_tgt - SMOOTHING * x_mean  # (tile_n, 1)

    # Mask padded rows of a ragged final tile (block may overhang the array).
    rows = i * tile_n + jax.lax.broadcasted_iota(jnp.int32, row_loss.shape, 0)
    row_loss = jnp.where(rows < total_n, row_loss, 0.0)

    acc_ref[0, 0] = acc_ref[0, 0] + jnp.sum(row_loss)

    @pl.when(i == pl.num_programs(0) - 1)
    def _finalize():
        out_ref[0, 0] = acc_ref[0, 0] * jnp.float32(1.0 / total_n)


def label_smoothing_cross_entropy(x, target, *, tile_n=None):
    """x: (N, C) float logits (f32 or bf16); target: (N,) int labels. Scalar f32."""
    n, c = x.shape
    tgt = target.astype(jnp.int32).reshape(n, 1)

    itemsize = jnp.dtype(x.dtype).itemsize
    if tile_n is None:
        # Keep each logits block <= ~2 MiB -> double-buffering fits every
        # generation's scoped-VMEM default without raising vmem_limit_bytes.
        max_rows = max(8, (2 * 1024 * 1024) // max(1, c * itemsize))
        tile_n = min(512, (max_rows // 8) * 8)
    if n <= tile_n:
        tile_n = n                      # single full-batch block (full-dim allowed)
    grid_n = pl.cdiv(n, tile_n)

    kernel = functools.partial(_ls_ce_kernel, tile_n=tile_n, total_n=n)

    out = pl.pallas_call(
        kernel,
        out_shape=jax.ShapeDtypeStruct((1, 1), jnp.float32),
        grid=(grid_n,),
        in_specs=[
            pl.BlockSpec((tile_n, c), lambda i: (i, 0)),       # logits tile in VMEM
            pl.BlockSpec((tile_n, 1), lambda i: (i, 0)),       # target tile in VMEM
        ],
        out_specs=pl.BlockSpec(memory_space=pltpu.SMEM),       # scalar result
        scratch_shapes=[pltpu.SMEM((1, 1), jnp.float32)],      # cross-grid accumulator
        compiler_params=pltpu.CompilerParams(
            dimension_semantics=("arbitrary",),                # serial accumulator axis
        ),
        cost_estimate=pl.CostEstimate(
            flops=5 * n * c,
            transcendentals=n * c,
            bytes_accessed=n * c * itemsize + n * 4 + 4,
        ),
    )(x, tgt)
    return out[0, 0]


def _reference(x, target):
    logprobs = jax.nn.log_softmax(x.astype(jnp.float32), axis=-1)
    nll = -jnp.take_along_axis(
        logprobs, target[:, None].astype(jnp.int32), axis=-1)[:, 0]
    smooth = -jnp.mean(logprobs, axis=-1)
    return jnp.mean(CONFIDENCE * nll + SMOOTHING * smooth)


if __name__ == "__main__":
    key = jax.random.PRNGKey(0)
    kx, kt = jax.random.split(key)
    # Small shapes; N=20 with tile_n=8 exercises the 3-step grid, the SMEM
    # accumulator, and the ragged-last-tile masking path.
    N, C = 20, 32
    x = jax.random.normal(kx, (N, C), dtype=jnp.float32)
    target = jax.random.randint(kt, (N,), 0, C, dtype=jnp.int32)

    loss = label_smoothing_cross_entropy(x, target, tile_n=8)
    loss = jax.block_until_ready(loss)

    ref = _reference(x, target)
    assert jnp.allclose(loss, ref, atol=1e-5, rtol=1e-5), (loss, ref)
    print("KERNEL_OK")
</pallas_src>

<mosaic_0001>
module attributes {stable_mosaic.version = 11 : i64} {
  func.func @_ls_ce_kernel(%arg0: i32, %arg1: memref<8x32xf32, #tpu.memory_space<vmem>>, %arg2: memref<8x1xi32, #tpu.memory_space<vmem>>, %arg3: memref<1x1xf32, #tpu.memory_space<smem>>, %arg4: memref<1x1xf32, #tpu.memory_space<smem>>) attributes {dimension_semantics = [#tpu.dimension_semantics<arbitrary>], iteration_bounds = array<i64: 3>, scalar_prefetch = 0 : i64, scratch_operands = 1 : i64, tpu.core_type = #tpu.core_type<tc>, window_params = [{transform_indices = @transform_0, window_bounds = array<i64: 8, 32>}, {transform_indices = @transform_1, window_bounds = array<i64: 8, 1>}, {transform_indices = @transform_2, window_bounds = array<i64: 1, 1>}]} {
    %c0_i32 = arith.constant 0 : i32
    %0 = arith.cmpi eq, %arg0, %c0_i32 : i32
    %1 = arith.extui %0 : i1 to i32
    %c0_i32_0 = arith.constant 0 : i32
    %2 = arith.cmpi ne, %1, %c0_i32_0 : i32
    scf.if %2 {
      %cst_18 = arith.constant 0.000000e+00 : f32
      %c0_19 = arith.constant 0 : index
      %c0_20 = arith.constant 0 : index
      %49 = memref.load %arg4[%c0_19, %c0_20] : memref<1x1xf32, #tpu.memory_space<smem>>
      memref.store %cst_18, %arg4[%c0_19, %c0_20] : memref<1x1xf32, #tpu.memory_space<smem>>
    } else {
    }
    %c0 = arith.constant 0 : index
    %c0_1 = arith.constant 0 : index
    %3 = vector.load %arg1[%c0, %c0_1] : memref<8x32xf32, #tpu.memory_space<vmem>>, vector<8x32xf32>
    %cst = arith.constant dense<0xFF800000> : vector<8xf32>
    %4 = vector.multi_reduction <maximumf>, %3, %cst [1] : vector<8x32xf32> to vector<8xf32>
    %5 = vector.shape_cast %4 : vector<8xf32> to vector<8x1xf32>
    %6 = vector.broadcast %5 : vector<8x1xf32> to vector<8x32xf32>
    %7 = arith.subf %3, %6 : vector<8x32xf32>
    %8 = math.exp %7 : vector<8x32xf32>
    %cst_2 = arith.constant dense<0.000000e+00> : vector<8xf32>
    %9 = vector.multi_reduction <add>, %8, %cst_2 [1] : vector<8x32xf32> to vector<8xf32>
    %10 = vector.shape_cast %9 : vector<8xf32> to vector<8x1xf32>
    %11 = math.log %10 : vector<8x1xf32>
    %c0_3 = arith.constant 0 : index
    %c0_4 = arith.constant 0 : index
    %12 = vector.load %arg2[%c0_3, %c0_4] : memref<8x1xi32, #tpu.memory_space<vmem>>, vector<8x1xi32>
    %13 = tpu.iota {dimensions = array<i32: 1>} : vector<8x32xi32>
    %14 = vector.broadcast %12 : vector<8x1xi32> to vector<8x32xi32>
    %15 = arith.cmpi eq, %13, %14 : vector<8x32xi32>
    %cst_5 = arith.constant 0.000000e+00 : f32
    %16 = vector.broadcast %cst_5 : f32 to vector<8x32xf32>
    %17 = arith.select %15, %3, %16 : vector<8x32xi1>, vector<8x32xf32>
    %cst_6 = arith.constant dense<0.000000e+00> : vector<8xf32>
    %18 = vector.multi_reduction <add>, %17, %cst_6 [1] : vector<8x32xf32> to vector<8xf32>
    %19 = vector.shape_cast %18 : vector<8xf32> to vector<8x1xf32>
    %cst_7 = arith.constant dense<0.000000e+00> : vector<8xf32>
    %20 = vector.multi_reduction <add>, %3, %cst_7 [1] : vector<8x32xf32> to vector<8xf32>
    %21 = vector.shape_cast %20 : vector<8xf32> to vector<8x1xf32>
    %cst_8 = arith.constant 3.125000e-02 : f32
    %22 = vector.broadcast %cst_8 : f32 to vector<8x1xf32>
    %23 = arith.mulf %21, %22 : vector<8x1xf32>
    %24 = arith.addf %5, %11 : vector<8x1xf32>
    %cst_9 = arith.constant 0.899999976 : f32
    %25 = vector.broadcast %cst_9 : f32 to vector<8x1xf32>
    %26 = arith.mulf %25, %19 : vector<8x1xf32>
    %27 = arith.subf %24, %26 : vector<8x1xf32>
    %cst_10 = arith.constant 1.000000e-01 : f32
    %28 = vector.broadcast %cst_10 : f32 to vector<8x1xf32>
    %29 = arith.mulf %28, %23 : vector<8x1xf32>
    %30 = arith.subf %27, %29 : vector<8x1xf32>
    %c8_i32 = arith.constant 8 : i32
    %31 = arith.muli %arg0, %c8_i32 : i32
    %32 = tpu.iota {dimensions = array<i32: 0>} : vector<8x1xi32>
    %33 = vector.broadcast %31 : i32 to vector<8x1xi32>
    %34 = arith.addi %33, %32 : vector<8x1xi32>
    %c20_i32 = arith.constant 20 : i32
    %35 = vector.broadcast %c20_i32 : i32 to vector<8x1xi32>
    %36 = arith.cmpi slt, %34, %35 : vector<8x1xi32>
    %cst_11 = arith.constant 0.000000e+00 : f32
    %37 = vector.broadcast %cst_11 : f32 to vector<8x1xf32>
    %38 = arith.select %36, %30, %37 : vector<8x1xi1>, vector<8x1xf32>
    %c0_12 = arith.constant 0 : index
    %c0_13 = arith.constant 0 : index
    %39 = memref.load %arg4[%c0_12, %c0_13] : memref<1x1xf32, #tpu.memory_space<smem>>
    %40 = vector.shape_cast %38 : vector<8x1xf32> to vector<1x8x1xf32>
    %cst_14 = arith.constant dense<0.000000e+00> : vector<1xf32>
    %41 = vector.multi_reduction <add>, %40, %cst_14 [1, 2] : vector<1x8x1xf32> to vector<1xf32>
    %42 = vector.shape_cast %41 : vector<1xf32> to vector<1x1x1xf32>
    %43 = vector.extract %42[0, 0, 0] : f32 from vector<1x1x1xf32>
    %44 = arith.addf %39, %43 : f32
    %c0_15 = arith.constant 0 : index
    %c0_16 = arith.constant 0 : index
    %45 = memref.load %arg4[%c0_15, %c0_16] : memref<1x1xf32, #tpu.memory_space<smem>>
    memref.store %44, %arg4[%c0_15, %c0_16] : memref<1x1xf32, #tpu.memory_space<smem>>
    %c2_i32 = arith.constant 2 : i32
    %46 = arith.cmpi eq, %arg0, %c2_i32 : i32
    %47 = arith.extui %46 : i1 to i32
    %c0_i32_17 = arith.constant 0 : i32
    %48 = arith.cmpi ne, %47, %c0_i32_17 : i32
    scf.if %48 {
      %c0_18 = arith.constant 0 : index
      %c0_19 = arith.constant 0 : index
      %49 = memref.load %arg4[%c0_18, %c0_19] : memref<1x1xf32, #tpu.memory_space<smem>>
      %cst_20 = arith.constant 5.000000e-02 : f32
      %50 = arith.mulf %49, %cst_20 : f32
      %c0_21 = arith.constant 0 : index
      %c0_22 = arith.constant 0 : index
      %51 = memref.load %arg3[%c0_21, %c0_22] : memref<1x1xf32, #tpu.memory_space<smem>>
      memref.store %50, %arg3[%c0_21, %c0_22] : memref<1x1xf32, #tpu.memory_space<smem>>
    } else {
    }
    return
  }
  func.func @transform_0(%arg0: i32) -> (i32, i32) {
    %c0_i32 = arith.constant 0 : i32
    %c0_i32_0 = arith.constant 0 : i32
    return %arg0, %c0_i32 : i32, i32
  }
  func.func @transform_1(%arg0: i32) -> (i32, i32) {
    %c0_i32 = arith.constant 0 : i32
    %c0_i32_0 = arith.constant 0 : i32
    return %arg0, %c0_i32 : i32, i32
  }
  func.func @transform_2(%arg0: i32) -> (i32, i32) {
    %c0_i32 = arith.constant 0 : i32
    %c0_i32_0 = arith.constant 0 : i32
    %c0_i32_1 = arith.constant 0 : i32
    return %c0_i32, %c0_i32_0 : i32, i32
  }
}

</mosaic_0001>

<bundles_post_ra>
// kernel: tpu_custom_call.1
= control target key start
LH: loop header
LB: loop body
LE: loop exit
PB: predicated region body
PF: predicated region fallthrough
CT: control target
= control target key end

     0   :  { %7 = vsyncpa [#allocation4], 0  ;;  %s359_s9 = smov 0   ;;  %s390_s0 = inlined_call_operand.vmem [shape: f32[20,32], index: 0, kind: input, shape index: {}]   ;;  %s391_s1 = inlined_call_operand.vmem [shape: s32[20,1], index: 1, kind: input, shape index: {}]   ;;  %s392_s2 = inlined_call_operand.hbm [shape: f32[1,1], index: 2, kind: output, shape index: {}]  }
   0x1 LB: > { %s365_s10 = sadd.s32 4294967295, %s339_s9   ;;  %p275_p0 = scmp.ge.s32.totalorder %s339_s9, 1  ;;  %s339_s9 = sphi %s359_s9, %s13_s9  }
   0x2   : > { %p116_p1 = scmp.lt.s32.totalorder %s339_s9, 4 }
   0x4   : > { %p117_p2 = pnand %p275_p0, %p116_p1 }
   0x5   : > { %p136_p3 = scmp.lt.s32.totalorder (!%p117_p2), %s365_s10, 2  ;;  %s279_s19 = sshll.u32 (!%p117_p2), %s365_s10, 3 }
   0x6   : > { %120 = sbr.rel (%p117_p2) target bundleno = 466 (0x1d2), region = 28  ;;  %p295_p4 = scmp.eq.s32.totalorder (!%p117_p2), %s365_s10, 0 }
   0x7   : > { %s342_s20 = smov (!%p117_p2), 0.0   ;;  %s219_s24 = sshll.u32 (!%p117_p2), %s392_s2, 4  ;;  %s220_s24 = int_to_ptr.hbm [resolvable:$true] %s219_s24 }
   0x8   : > { %p296_p5 = scmp.eq.s32.totalorder (!%p117_p2), %s365_s10, 2  ;;  %s343_s28 = smov (!%p117_p2), [#allocation3]  }
   0xb   : > { %v341_v0 = vmov 0   ;;  %s137_s11 = scalar_select %p136_p3, %s365_s10, 2  ;;  %vm151_vm0 = vcmask 261120   ;;  %v164_v10 = vlaneseq  ;;  %v186_v20 = vstv %s279_s19 }
   0xc   : > { %310 = vset.pattern.permute.xlu0 %v341_v0  ;;  %vm191_vm3 = vcmask 7168   ;;  %288 = sst [smem:[#allocation2]] (%p295_p4), %s342_s20 }
   0xd   : > { %s276_s12 = sshll.u32 %s137_s11, 3  ;;  %v165_v11 = vand.u32 127, %v164_v10  ;;  %v185_v17 = vshrl.u32 %v164_v10, 7  ;;  %s190_s21 = sld [smem:[#allocation2]] }
   0xe   : > { %s139_s15 = scalar_lea.vmem %s390_s0, %s276_s12  ;;  %s143_s18 = scalar_lea.vmem %s391_s1, %s276_s12 }
   0xf   : > { %v150_v1 = vld [vmem:[%s139_s15] sm:$0xff]  ;;  %v187_v24 = vadd.s32 %v186_v20, %v185_v17 }
  0x10   : > { %v152_v2 = vsel %vm151_vm0, %v150_v1, -inf  ;;  %v163_v3 = vld [vmem:[%s143_s18] sm:$0xff]  ;;  %v174_v4 = vsel %vm151_vm0, %v150_v1, 0.0 }
  0x11   : > { %153 = vmax.xlane.f32.xlu0 %v152_v2  ;;  %175 = vadd.xlane.f32.xlu2 %v174_v4  ;;  %vm188_vm2 = vcmp.lt.s32.totalorder %v187_v24, 20 }
  0x25   : > { %167 = vperm.xlu0 %310, %v163_v3  }
  0x84   : > { %v154_v5 = vpop.xlane.xlu0 %153  ;;  %v176_v16 = vpop.xlane.xlu2 %175 }
  0x85   : > { %v155_v6 = vsub.f32 %v150_v1, %v154_v5  ;;  %v177_v19 = vmul.f32 0.03125, %v176_v16 }
  0x87   : > { %v156_v7 = vmul.f32 1.442695, %v155_v6  ;;  %v181_v25 = vmul.f32 0.1, %v177_v19 }
  0x89   : > { %311 = vpow2.f32 %v156_v7 }
  0x8f   : > { %v312_v8 = vpop.eup %311 }
  0x90   : > { %v158_v9 = vsel %vm151_vm0, %v312_v8, 0.0 }
  0x91   : > { %159 = vadd.xlane.f32.xlu1 %v158_v9 }
  0x97   : > { %v168_v12 = vpop.permute.xlu0 %167 }
  0x98   : > { %vm169_vm1 = vcmp.eq.s32.totalorder %v165_v11, %v168_v12 }
  0x99   : > { %v170_v13 = vsel %vm169_vm1, %v150_v1, 0.0 }
  0x9a   : > { %v171_v14 = vsel %vm151_vm0, %v170_v13, 0.0 }
  0x9b   : > { %172 = vadd.xlane.f32.xlu1 %v171_v14 }
 0x104   : > { %v160_v15 = vpop.xlane.xlu1 %159 }
 0x105   : > { %313 = vlog2.f32 %v160_v15 }
 0x10b   : > { %v314_v18 = vpop.eup %313 }
 0x10c   : > { %v162_v21 = vmul.f32 0.6931472, %v314_v18 }
 0x10e   : > { %v178_v22 = vadd.f32 %v162_v21, %v154_v5  ;;  %v173_v23 = vpop.xlane.xlu1 %172 }
 0x10f   : > { %v179_v26 = vmul.f32 0.9, %v173_v23 }
 0x111   : > { %v180_v27 = vsub.f32 %v178_v22, %v179_v26 }
 0x113   : > { %v182_v28 = vsub.f32 %v180_v27, %v181_v25 }
 0x115   : > { %v189_v29 = vsel %vm188_vm2, %v182_v28, 0.0 }
 0x116   : > { %v192_v30 = vsel %vm191_vm3, %v189_v29, 0.0 }
 0x117   : > { %193 = vadd.xlane.f32.xlu2 %v192_v30 }
 0x18a   : > { %v194_v31 = vpop.xlane.xlu2 %193 }
 0x18b   : > { %v195_v32 = vrot.slane %v194_v31, 4 }
 0x18d   : > { %v196_v33 = vadd.f32 %v195_v32, %v194_v31 }
 0x18f   : > { %v197_v34 = vrot.slane %v196_v33, 2 }
 0x191   : > { %v198_v35 = vadd.f32 %v197_v34, %v196_v33 }
 0x193   : > { %v199_v36 = vrot.slane %v198_v35, 1 }
 0x195   : > { %v200_v37 = vadd.f32 %v199_v36, %v198_v35 }
 0x197   : > { %285 = vpush %v200_v37 }
 0x1c8   : > { %s286_s25 = spop %285 }
 0x1c9   : > { %s202_s26 = sadd.f32 %s286_s25, %s190_s21 }
 0x1cb   : > { %204 = sst [smem:[#allocation2]] %s202_s26  ;;  %s210_s27 = smul.f32 0.05, %s202_s26 }
 0x1cd   : > { %290 = sst [smem:[#allocation3]] (%p296_p5), %s210_s27 }
 0x1ce   : > { %292 = dma.smem_to_hbm (%p296_p5), %s343_s28, 16, %s220_s24, [#allocation4]  }
 0x1cf   : > { %334 = dma.done.wait (%p296_p5), [#allocation4], 16  }
 0x1d0   : > { %336 = vsyncadd (%p296_p5), [#allocation4], 4294967280 }
 0x1d1   : > { %228 = sfence }
 0x1d2 PF: > { %s13_s9 = sadd.s32 1, %s339_s9  }
 0x1d3   : > { %p10_p6 = scmp.ge.s32.totalorder %s13_s9, 5  }
 0x1d5   :  { %12 = sbr.rel (!%p10_p6) target bundleno = 1 (0x1), region = 69 }
 0x1da   :  { %234 = vsyncpa [#allocation4], 1 }
 0x1db   :  { %236 = vsyncpa [#allocation4 + $0x1], 1 }

</bundles_post_ra>
